<compile_context>
chip_gen: v7x
topology: tpu7x:2x2x1
jax: 0.10.0
libtpu: 0.0.40
codegen_flags: <defaults>
</compile_context>

<pallas_src>
import numpy as np

import jax
import jax.numpy as jnp
from jax.experimental import pallas as pl
from jax.experimental.pallas import tpu as pltpu

C_OUT = 32
KH = KW = 5
RB = KH + 1  # x rows covered by one pooled output row (2 conv rows + 4) = 6


def conv_relu_pool_kernel(xr_ref, wband_ref, bias_ref, o_ref):
    # xr_ref:    (bt, HPAD, RB*W)   row bundles, one per pooled output row
    # wband_ref: (RB*W, 4*WBLK)     banded conv weight, columns [di|dj|pw|c]
    # bias_ref:  (1, WBLK)          f32 bias tiled over pw (pw*32 + c)
    # o_ref:     (bt, HPAD, WBLK)   pooled output, lane-dense (pw*32 + c)
    bt, hpad, k = xr_ref.shape
    n = wband_ref.shape[1]
    nhalf = n // 2
    wblk = nhalf // 2

    # One MXU matmul per batch chunk; the leading-dim collapse is tile-aligned
    # because HPAD is a multiple of 8.
    lhs = xr_ref[...].reshape(bt * hpad, k)
    acc = jnp.dot(lhs, wband_ref[...], preferred_element_type=jnp.float32)

    # 2x2 max-pool == two maxes between 128-aligned lane halves:
    #   first over the conv-row offset di, then over the conv-col offset dj.
    rmax = jnp.maximum(acc[:, :nhalf], acc[:, nhalf:])
    cmax = jnp.maximum(rmax[:, :wblk], rmax[:, wblk:])

    # Single bias add + ReLU after the max (exact; saves 3/4 of the VPU work).
    out = jnp.maximum(cmax + bias_ref[...], 0.0)
    o_ref[...] = out.reshape(bt, hpad, wblk).astype(o_ref.dtype)


def client_model_forward(x, w, b, *, batch_tile=256,
                         compute_dtype=jnp.bfloat16, num_cores=None,
                         channels_last=False):
    """x: (B, 1, H, W) NCHW; w: (C_OUT, 1, 5, 5); b: (C_OUT,)."""
    B, _, H, W = x.shape
    HO, WO = H - KH + 1, W - KW + 1          # conv output spatial (valid)
    HP, WP = HO // 2, WO // 2                # MaxPool2d(2,2) floors remainders
    assert HP >= 1 and WP >= 1, "input too small for conv5x5 + pool2x2"

    HPAD = ((HP + 7) // 8) * 8               # sublane-aligned pooled rows
    WBLK = ((WP * C_OUT + 127) // 128) * 128 # lane-aligned pooled cols (192->256)
    NHALF = 2 * WBLK
    N = 2 * NHALF
    K = RB * W                               # 6*W = 96 for W=16

    # ---- compact row-bundle gather (6 slices; ~2.3 KB/sample, not 16 KB) ----
    x2 = x[:, 0].astype(compute_dtype)                       # (B, H, W)
    xr = jnp.stack(
        [x2[:, 2 * ph: 2 * ph + RB, :].reshape(B, K) for ph in range(HP)],
        axis=1)                                              # (B, HP, K)

    # ---- banded weight (K, N): columns grouped [di | dj | pw | c] ----------
    # acc[row=(b,ph), di*NHALF + dj*WBLK + pw*32 + c] == conv(x)[b, c, 2ph+di, 2pw+dj] - bias[c]
    rows, cols, widx = [], [], []
    for di in range(2):
        for dj in range(2):
            for pw in range(WP):
                for ki in range(KH):
                    for kj in range(KW):
                        r = (di + ki) * W + (2 * pw + dj + kj)
                        c0 = di * NHALF + dj * WBLK + pw * C_OUT
                        for c in range(C_OUT):
                            rows.append(r)
                            cols.append(c0 + c)
                            widx.append(c * KH * KW + ki * KW + kj)
    wflat = w.reshape(-1).astype(jnp.float32)
    wband = jnp.zeros((K, N), jnp.float32)
    wband = wband.at[np.asarray(rows), np.asarray(cols)].set(
        wflat[np.asarray(widx)])
    wband = wband.astype(compute_dtype)

    # Bias laid out to match the pooled column packing pw*32 + c (f32 epilogue).
    bias_row = jnp.concatenate(
        [jnp.tile(b.astype(jnp.float32), WP),
         jnp.zeros((WBLK - WP * C_OUT,), jnp.float32)]).reshape(1, WBLK)

    # ---- batch chunking: only force a split if the chip has >1 TensorCore --
    if num_cores is None:
        try:
            num_cores = int(getattr(jax.devices()[0], "num_cores", 1) or 1)
        except Exception:
            num_cores = 1
    target_chunks = max(1, min(B, num_cores))
    bt = max(1, min(batch_tile, pl.cdiv(B, target_chunks)))
    n_chunks = pl.cdiv(B, bt)
    BP = n_chunks * bt

    xr = jnp.pad(xr, ((0, BP - B), (0, HPAD - HP), (0, 0)))

    out = pl.pallas_call(
        conv_relu_pool_kernel,
        out_shape=jax.ShapeDtypeStruct((BP, HPAD, WBLK), jnp.float32),
        grid_spec=pltpu.PrefetchScalarGridSpec(
            num_scalar_prefetch=0,
            grid=(n_chunks,),
            in_specs=[
                pl.BlockSpec((bt, HPAD, K), lambda i: (i, 0, 0)),
                pl.BlockSpec((K, N), lambda i: (0, 0)),
                pl.BlockSpec((1, WBLK), lambda i: (0, 0)),
            ],
            out_specs=pl.BlockSpec((bt, HPAD, WBLK), lambda i: (i, 0, 0)),
        ),
        compiler_params=pltpu.CompilerParams(
            dimension_semantics=("parallel",),
            vmem_limit_bytes=32 * 1024 * 1024,
        ),
    )(xr, wband, bias_row)

    # Drop row/lane/batch padding (padded slots hold relu(bias) / zeros).
    out = out[:B, :HP, :WP * C_OUT].reshape(B, HP, WP, C_OUT)   # NHWC
    if channels_last:
        return out
    return out.transpose(0, 3, 1, 2)                            # (B, 32, HP, WP)


if __name__ == "__main__":
    key = jax.random.PRNGKey(0)
    kx, kw, kb = jax.random.split(key, 3)

    B, H, W = 2, 16, 16
    x = jax.random.normal(kx, (B, 1, H, W), dtype=jnp.float32)
    # deterministic synthetic parameters (shapes from nn.Conv2d(1, 32, 5))
    w = jax.random.normal(kw, (C_OUT, 1, KH, KW), dtype=jnp.float32) * 0.1
    b = jax.random.normal(kb, (C_OUT,), dtype=jnp.float32) * 0.1

    # pure-JAX reference (conv -> relu -> maxpool 2x2), dropout = identity
    ref = jax.lax.conv_general_dilated(
        x, w, window_strides=(1, 1), padding="VALID",
        dimension_numbers=("NCHW", "OIHW", "NCHW"))
    ref = jnp.maximum(ref + b.reshape(1, C_OUT, 1, 1), 0.0)
    ref = jax.lax.reduce_window(ref, -jnp.inf, jax.lax.max,
                                (1, 1, 2, 2), (1, 1, 2, 2), "VALID")

    # f32 parity path.
    out_f32 = jax.block_until_ready(
        client_model_forward(x, w, b, compute_dtype=jnp.float32))
    assert out_f32.shape == (B, C_OUT, (H - 4) // 2, (W - 4) // 2)
    assert jnp.allclose(out_f32, ref, atol=1e-3, rtol=1e-3), "f32 mismatch vs reference"

    # bf16 default path (halves HBM->VMEM traffic; f32 MXU accumulation).
    out_bf16 = jax.block_until_ready(client_model_forward(x, w, b))
    assert out_bf16.shape == ref.shape
    assert jnp.allclose(out_bf16, ref, atol=6e-2, rtol=3e-2), "bf16 mismatch vs reference"

    print("KERNEL_OK")
</pallas_src>

<mosaic_0001>
module attributes {stable_mosaic.version = 11 : i64} {
  func.func @conv_relu_pool_kernel(%arg0: i32, %arg1: memref<2x8x96xf32, #tpu.memory_space<vmem>>, %arg2: memref<96x1024xf32, #tpu.memory_space<vmem>>, %arg3: memref<1x256xf32, #tpu.memory_space<vmem>>, %arg4: memref<2x8x256xf32, #tpu.memory_space<vmem>>) attributes {dimension_semantics = [#tpu.dimension_semantics<parallel>], iteration_bounds = array<i64: 1>, scalar_prefetch = 0 : i64, scratch_operands = 0 : i64, tpu.core_type = #tpu.core_type<tc>, window_params = [{transform_indices = @transform_0, window_bounds = array<i64: 2, 8, 96>}, {pipeline_mode = #tpu.pipeline_mode<synchronous>, transform_indices = @transform_1, window_bounds = array<i64: 96, 1024>}, {pipeline_mode = #tpu.pipeline_mode<synchronous>, transform_indices = @transform_2, window_bounds = array<i64: 1, 256>}, {transform_indices = @transform_3, window_bounds = array<i64: 2, 8, 256>}]} {
    %c0 = arith.constant 0 : index
    %c0_0 = arith.constant 0 : index
    %c0_1 = arith.constant 0 : index
    %0 = vector.load %arg1[%c0, %c0_0, %c0_1] : memref<2x8x96xf32, #tpu.memory_space<vmem>>, vector<2x8x96xf32>
    %1 = vector.shape_cast %0 : vector<2x8x96xf32> to vector<16x96xf32>
    %c0_2 = arith.constant 0 : index
    %c0_3 = arith.constant 0 : index
    %2 = vector.load %arg2[%c0_2, %c0_3] : memref<96x1024xf32, #tpu.memory_space<vmem>>, vector<96x1024xf32>
    %cst = arith.constant dense<0.000000e+00> : vector<16x1024xf32>
    %3 = tpu.matmul %1, %2, %cst {dimension_numbers = #tpu.dot_dimension_numbers<[1], [0], [0], [1], [0, 0, 1, 1], [], []>} : vector<16x96xf32>, vector<96x1024xf32>, vector<16x1024xf32> -> vector<16x1024xf32>
    %4 = vector.extract_strided_slice %3 {offsets = [0, 0], sizes = [16, 512], strides = [1, 1]} : vector<16x1024xf32> to vector<16x512xf32>
    %5 = vector.extract_strided_slice %3 {offsets = [0, 512], sizes = [16, 512], strides = [1, 1]} : vector<16x1024xf32> to vector<16x512xf32>
    %6 = arith.maximumf %4, %5 : vector<16x512xf32>
    %7 = vector.extract_strided_slice %6 {offsets = [0, 0], sizes = [16, 256], strides = [1, 1]} : vector<16x512xf32> to vector<16x256xf32>
    %8 = vector.extract_strided_slice %6 {offsets = [0, 256], sizes = [16, 256], strides = [1, 1]} : vector<16x512xf32> to vector<16x256xf32>
    %9 = arith.maximumf %7, %8 : vector<16x256xf32>
    %c0_4 = arith.constant 0 : index
    %c0_5 = arith.constant 0 : index
    %10 = vector.load %arg3[%c0_4, %c0_5] : memref<1x256xf32, #tpu.memory_space<vmem>>, vector<1x256xf32>
    %11 = vector.broadcast %10 : vector<1x256xf32> to vector<16x256xf32>
    %12 = arith.addf %9, %11 : vector<16x256xf32>
    %cst_6 = arith.constant 0.000000e+00 : f32
    %13 = vector.broadcast %cst_6 : f32 to vector<16x256xf32>
    %14 = arith.maximumf %12, %13 : vector<16x256xf32>
    %15 = vector.shape_cast %14 : vector<16x256xf32> to vector<2x8x256xf32>
    %c0_7 = arith.constant 0 : index
    %c0_8 = arith.constant 0 : index
    %c0_9 = arith.constant 0 : index
    %16 = vector.load %arg4[%c0_7, %c0_8, %c0_9] : memref<2x8x256xf32, #tpu.memory_space<vmem>>, vector<2x8x256xf32>
    tpu.vector_store %arg4[%c0_7, %c0_8, %c0_9], %15 {strides = array<i32>} : memref<2x8x256xf32, #tpu.memory_space<vmem>>, vector<2x8x256xf32>,
    return
  }
  func.func @transform_0(%arg0: i32) -> (i32, i32, i32) {
    %c0_i32 = arith.constant 0 : i32
    %c0_i32_0 = arith.constant 0 : i32
    %c0_i32_1 = arith.constant 0 : i32
    return %arg0, %c0_i32, %c0_i32_0 : i32, i32, i32
  }
  func.func @transform_1(%arg0: i32) -> (i32, i32) {
    %c0_i32 = arith.constant 0 : i32
    %c0_i32_0 = arith.constant 0 : i32
    %c0_i32_1 = arith.constant 0 : i32
    return %c0_i32, %c0_i32_0 : i32, i32
  }
  func.func @transform_2(%arg0: i32) -> (i32, i32) {
    %c0_i32 = arith.constant 0 : i32
    %c0_i32_0 = arith.constant 0 : i32
    %c0_i32_1 = arith.constant 0 : i32
    return %c0_i32, %c0_i32_0 : i32, i32
  }
  func.func @transform_3(%arg0: i32) -> (i32, i32, i32) {
    %c0_i32 = arith.constant 0 : i32
    %c0_i32_0 = arith.constant 0 : i32
    %c0_i32_1 = arith.constant 0 : i32
    return %arg0, %c0_i32, %c0_i32_0 : i32, i32, i32
  }
}

</mosaic_0001>

<bundles_post_ra>
// kernel: tpu_custom_call.1
= control target key start
LH: loop header
LB: loop body
LE: loop exit
PB: predicated region body
PF: predicated region fallthrough
CT: control target
= control target key end

     0   :  { %8 = vsyncpa [#allocation3], 0  ;;  %s793_s0 = inlined_call_operand.hbm [shape: f32[2,8,96], index: 0, kind: input, shape index: {}]   ;;  %s794_s1 = inlined_call_operand.hbm [shape: f32[96,1024], index: 1, kind: input, shape index: {}]   ;;  %s795_s2 = inlined_call_operand.vmem [shape: f32[1,256], index: 2, kind: input, shape index: {}]   ;;  %s796_s3 = inlined_call_operand.hbm [shape: f32[2,8,256], index: 3, kind: output, shape index: {}]  }
   0x1   :  { %9 = vsyncpa [#allocation6], 0 }
   0x2   :  { %10 = vsyncpa [#allocation4], 0  ;;  %s696_s12 = smov [#allocation2]   ;;  %s624_s16 = scalar_lea.hbm %s793_s0, 256 }
   0x3   :  { %s16_s13 = sshll.u32 %s696_s12, 4  ;;  %p625_p0 = scmp.ne.s32.totalorder %s793_s0, %s624_s16  ;;  %s17_s13 = int_to_ptr.vmem [resolvable:$true] %s16_s13 }
   0x4   :  { %p628_p1 = scmp.lt.u32.totalorder %s624_s16, %s793_s0 }
   0x6   :  { %p630_p2 = pnand %p628_p1, %p625_p0 }
   0x8   :  { %633 = shalt.err (!%p630_p2)
}
   0x9   :  { %s634_s21 = scalar_lea.vmem %s17_s13, 256  ;;  %p639_p4 = scmp.lt.s32.totalorder %s17_s13, %s17_s13 }
   0xa   :  { %p635_p3 = scmp.ne.s32.totalorder %s17_s13, %s634_s21  ;;  %p640_p5 = scmp.lt.s32.totalorder %s634_s21, %s634_s21 }
   0xc   :  { %p641_p6 = por %p640_p5, %p639_p4 }
   0xe   :  { %p642_p7 = pnand %p641_p6, %p635_p3 }
  0x10   :  { %645 = shalt.err (!%p642_p7)
}
  0x11   :  { %s697_s22 = smov 128   ;;  %s698_s23 = smov 8  }
  0x12   :  { %22 = dma.hbm_to_vmem [thread:$0]  %s793_s0, 256, %s17_s13, [#allocation3], %s697_s22, %s697_s22, %s698_s23  }
  0x13   :  { %s699_s26 = smov [#allocation5]   ;;  %s646_s30 = scalar_lea.hbm %s794_s1, 12288 }
  0x14   :  { %s28_s27 = sshll.u32 %s699_s26, 4  ;;  %p647_p8 = scmp.ne.s32.totalorder %s794_s1, %s646_s30  ;;  %s29_s27 = int_to_ptr.vmem [resolvable:$true] %s28_s27 }
  0x15   :  { %p650_p9 = scmp.lt.u32.totalorder %s646_s30, %s794_s1 }
  0x17   :  { %p652_p10 = pnand %p650_p9, %p647_p8 }
  0x19   :  { %655 = shalt.err (!%p652_p10)
}
  0x1a   :  { %s656_s8 = scalar_lea.vmem %s29_s27, 12288  ;;  %p661_p12 = scmp.lt.s32.totalorder %s29_s27, %s29_s27 }
  0x1b   :  { %p657_p11 = scmp.ne.s32.totalorder %s29_s27, %s656_s8  ;;  %p662_p13 = scmp.lt.s32.totalorder %s656_s8, %s656_s8 }
  0x1d   :  { %p663_p0 = por %p662_p13, %p661_p12 }
  0x1f   :  { %p664_p1 = pnand %p663_p0, %p657_p11 }
  0x21   :  { %667 = shalt.err (!%p664_p1)
}
  0x22   :  { %s700_s0 = smov 1024   ;;  %s701_s9 = smov 64  }
  0x23   :  { %34 = dma.hbm_to_vmem [thread:$0]  %s794_s1, 12288, %s29_s27, [#allocation6], %s700_s0, %s700_s0, %s701_s9  }
  0x24   :  { %690 = dma.done.wait [#allocation3], 256  }
  0x25   :  { %691 = vsyncadd [#allocation3], 4294967040 }
  0x26   :  { %692 = dma.done.wait [#allocation6], 12288  }
  0x27   :  { %693 = vsyncadd [#allocation6], 4294955008  ;;  %v702_v0 = vmov 0.0   ;;  %v46_v1 = vld [vmem:[#allocation5 + $0x8] sm:$0xff]  ;;  %v48_v3 = vld [vmem:[#allocation5 + $0x18] sm:$0xff]  ;;  %vm141_vm0 = vcmask 785408  }
  0x28   :  { %212 = vmatprep.mubr.f32.mxu0 %v702_v0  ;;  %289 = vmatprep.mubr.f32.mxu1 %v702_v0  ;;  %v54_v2 = vld [vmem:[#allocation5 + $0x48] sm:$0xff]  ;;  %v56_v5 = vld [vmem:[#allocation5 + $0x58] sm:$0xff]  ;;  %v45_v6 = vld [vmem:[#allocation5] sm:$0xff] }
  0x29   :  { %v518_v4 = vpack.c.bf16 %v54_v2, %v46_v1  ;;  %v53_v7 = vld [vmem:[#allocation5 + $0x40] sm:$0xff]  ;;  %v542_v8 = vpack.c.bf16 %v56_v5, %v48_v3  ;;  %v47_v10 = vld [vmem:[#allocation5 + $0x10] sm:$0xff]  ;;  %v62_v12 = vld [vmem:[#allocation5 + $0x88] sm:$0xff] }
  0x2a   :  { %v520_v9 = vpack.c.bf16 %v53_v7, %v45_v6  ;;  %v55_v11 = vld [vmem:[#allocation5 + $0x50] sm:$0xff]  ;;  %v70_v14 = vld [vmem:[#allocation5 + $0xc8] sm:$0xff]  ;;  %v64_v15 = vld [vmem:[#allocation5 + $0x98] sm:$0xff] }
  0x2b   :  { %519 = vmatprep.subr.bf16.mxu0 %v518_v4  ;;  %v544_v13 = vpack.c.bf16 %v55_v11, %v47_v10  ;;  %v72_v16 = vld [vmem:[#allocation5 + $0xd8] sm:$0xff]  ;;  %543 = vmatprep.subr.bf16.mxu1 %v542_v8  ;;  %v522_v17 = vpack.c.bf16 %v70_v14, %v62_v12  ;;  %v61_v19 = vld [vmem:[#allocation5 + $0x80] sm:$0xff]  ;;  %v63_v21 = vld [vmem:[#allocation5 + $0x90] sm:$0xff] }
  0x2c   :  { %521 = vmatpush1.bf16.msra.mxu0 %v520_v9  ;;  %v546_v18 = vpack.c.bf16 %v72_v16, %v64_v15  ;;  %v69_v20 = vld [vmem:[#allocation5 + $0xc0] sm:$0xff]  ;;  %v71_v23 = vld [vmem:[#allocation5 + $0xd0] sm:$0xff]  ;;  %v78_v24 = vld [vmem:[#allocation5 + $0x108] sm:$0xff] }
  0x2d   :  { %545 = vmatpush1.bf16.msra.mxu1 %v544_v13  ;;  %v524_v22 = vpack.c.bf16 %v69_v20, %v61_v19  ;;  %v86_v25 = vld [vmem:[#allocation5 + $0x148] sm:$0xff]  ;;  %523 = vmatprep.subr.bf16.mxu0 %v522_v17  ;;  %v548_v26 = vpack.c.bf16 %v71_v23, %v63_v21  ;;  %v80_v28 = vld [vmem:[#allocation5 + $0x118] sm:$0xff]  ;;  %v77_v30 = vld [vmem:[#allocation5 + $0x100] sm:$0xff] }
  0x2e   :  { %547 = vmatprep.subr.bf16.mxu1 %v546_v18  ;;  %v526_v27 = vpack.c.bf16 %v86_v25, %v78_v24  ;;  %v88_v29 = vld [vmem:[#allocation5 + $0x158] sm:$0xff]  ;;  %v85_v32 = vld [vmem:[#allocation5 + $0x140] sm:$0xff]  ;;  %v79_v33 = vld [vmem:[#allocation5 + $0x110] sm:$0xff] }
  0x2f   :  { %v550_v31 = vpack.c.bf16 %v88_v29, %v80_v28  ;;  %v87_v34 = vld [vmem:[#allocation5 + $0x150] sm:$0xff]  ;;  %v528_v35 = vpack.c.bf16 %v85_v32, %v77_v30  ;;  %v94_v36 = vld [vmem:[#allocation5 + $0x188] sm:$0xff]  ;;  %v96_v38 = vld [vmem:[#allocation5 + $0x198] sm:$0xff] }
  0x30   :  { %525 = vmatpush1.bf16.msra.mxu0 %v524_v22  ;;  %v102_v37 = vld [vmem:[#allocation5 + $0x1c8] sm:$0xff]  ;;  %v552_v39 = vpack.c.bf16 %v87_v34, %v79_v33  ;;  %v104_v41 = vld [vmem:[#allocation5 + $0x1d8] sm:$0xff]  ;;  %v93_v42 = vld [vmem:[#allocation5 + $0x180] sm:$0xff] }
  0x31   :  { %549 = vmatpush1.bf16.msra.mxu1 %v548_v26  ;;  %527 = vmatprep.subr.bf16.mxu0 %v526_v27  ;;  %v530_v40 = vpack.c.bf16 %v102_v37, %v94_v36  ;;  %v101_v43 = vld [vmem:[#allocation5 + $0x1c0] sm:$0xff]  ;;  %v554_v44 = vpack.c.bf16 %v104_v41, %v96_v38  ;;  %v95_v45 = vld [vmem:[#allocation5 + $0x190] sm:$0xff]  ;;  %v110_v47 = vld [vmem:[#allocation5 + $0x208] sm:$0xff] }
  0x32   :  { %551 = vmatprep.subr.bf16.mxu1 %v550_v31  ;;  %v103_v46 = vld [vmem:[#allocation5 + $0x1d0] sm:$0xff]  ;;  %v118_v48 = vld [vmem:[#allocation5 + $0x248] sm:$0xff]  ;;  %v112_v49 = vld [vmem:[#allocation5 + $0x218] sm:$0xff]  ;;  %v532_v51 = vpack.c.bf16 %v101_v43, %v93_v42 }
  0x33   :  { %v120_v50 = vld [vmem:[#allocation5 + $0x258] sm:$0xff]  ;;  %v556_v52 = vpack.c.bf16 %v103_v46, %v95_v45  ;;  %v534_v53 = vpack.c.bf16 %v118_v48, %v110_v47  ;;  %v109_v54 = vld [vmem:[#allocation5 + $0x200] sm:$0xff]  ;;  %v111_v56 = vld [vmem:[#allocation5 + $0x210] sm:$0xff] }
  0x34   :  { %529 = vmatpush1.bf16.msra.mxu0 %v528_v35  ;;  %v117_v55 = vld [vmem:[#allocation5 + $0x240] sm:$0xff]  ;;  %v558_v57 = vpack.c.bf16 %v120_v50, %v112_v49  ;;  %v119_v58 = vld [vmem:[#allocation5 + $0x250] sm:$0xff]  ;;  %v126_v59 = vld [vmem:[#allocation5 + $0x288] sm:$0xff] }
  0x35   :  { %553 = vmatpush1.bf16.msra.mxu1 %v552_v39  ;;  %531 = vmatprep.subr.bf16.mxu0 %v530_v40  ;;  %v134_v60 = vld [vmem:[#allocation5 + $0x2c8] sm:$0xff]  ;;  %v128_v61 = vld [vmem:[#allocation5 + $0x298] sm:$0xff]  ;;  %v536_v63 = vpack.c.bf16 %v117_v55, %v109_v54  ;;  %v560_v1 = vpack.c.bf16 %v119_v58, %v111_v56  ;;  %v125_v3 = vld [vmem:[#allocation5 + $0x280] sm:$0xff] }
  0x36   :  { %555 = vmatprep.subr.bf16.mxu1 %v554_v44  ;;  %v136_v62 = vld [vmem:[#allocation5 + $0x2d8] sm:$0xff]  ;;  %v538_v2 = vpack.c.bf16 %v134_v60, %v126_v59  ;;  %v133_v4 = vld [vmem:[#allocation5 + $0x2c0] sm:$0xff]  ;;  %v127_v5 = vld [vmem:[#allocation5 + $0x290] sm:$0xff] }
  0x37   :  { %v562_v6 = vpack.c.bf16 %v136_v62, %v128_v61  ;;  %v135_v7 = vld [vmem:[#allocation5 + $0x2d0] sm:$0xff]  ;;  %v50_v8 = vld [vmem:[#allocation5 + $0x28] sm:$0xff]  ;;  %v52_v10 = vld [vmem:[#allocation5 + $0x38] sm:$0xff]  ;;  %v540_v12 = vpack.c.bf16 %v133_v4, %v125_v3 }
  0x38   :  { %533 = vmatpush1.bf16.msra.mxu0 %v532_v51  ;;  %v58_v9 = vld [vmem:[#allocation5 + $0x68] sm:$0xff]  ;;  %v60_v11 = vld [vmem:[#allocation5 + $0x78] sm:$0xff]  ;;  %v564_v13 = vpack.c.bf16 %v135_v7, %v127_v5  ;;  %v49_v15 = vld [vmem:[#allocation5 + $0x20] sm:$0xff] }
  0x39   :  { %557 = vmatpush1.bf16.msra.mxu1 %v556_v52  ;;  %535 = vmatprep.subr.bf16.mxu0 %v534_v53  ;;  %v566_v14 = vpack.c.bf16 %v58_v9, %v50_v8  ;;  %v57_v16 = vld [vmem:[#allocation5 + $0x60] sm:$0xff]  ;;  %v51_v17 = vld [vmem:[#allocation5 + $0x30] sm:$0xff]  ;;  %v590_v18 = vpack.c.bf16 %v60_v11, %v52_v10  ;;  %v66_v20 = vld [vmem:[#allocation5 + $0xa8] sm:$0xff] }
  0x3a   :  { %559 = vmatprep.subr.bf16.mxu1 %v558_v57  ;;  %v59_v19 = vld [vmem:[#allocation5 + $0x70] sm:$0xff]  ;;  %v74_v21 = vld [vmem:[#allocation5 + $0xe8] sm:$0xff]  ;;  %v68_v22 = vld [vmem:[#allocation5 + $0xb8] sm:$0xff]  ;;  %v568_v25 = vpack.c.bf16 %v57_v16, %v49_v15 }
  0x3b   :  { %v76_v23 = vld [vmem:[#allocation5 + $0xf8] sm:$0xff]  ;;  %v752_v24 = vld [vmem:[#allocation2] sm:$0xff]  ;;  %v592_v26 = vpack.c.bf16 %v59_v19, %v51_v17  ;;  %v570_v27 = vpack.c.bf16 %v74_v21, %v66_v20  ;;  %v65_v28 = vld [vmem:[#allocation5 + $0xa0] sm:$0xff] }
  0x3c   :  { %537 = vmatpush1.bf16.msra.mxu0 %v536_v63  ;;  %v73_v29 = vld [vmem:[#allocation5 + $0xe0] sm:$0xff]  ;;  %v67_v30 = vld [vmem:[#allocation5 + $0xb0] sm:$0xff]  ;;  %v594_v31 = vpack.c.bf16 %v76_v23, %v68_v22  ;;  %v82_v33 = vld [vmem:[#allocation5 + $0x128] sm:$0xff] }
  0x3d   :  { %561 = vmatpush1.bf16.msra.mxu1 %v560_v1  ;;  %539 = vmatprep.subr.bf16.mxu0 %v538_v2  ;;  %v75_v32 = vld [vmem:[#allocation5 + $0xf0] sm:$0xff]  ;;  %v90_v34 = vld [vmem:[#allocation5 + $0x168] sm:$0xff]  ;;  %v84_v35 = vld [vmem:[#allocation5 + $0x138] sm:$0xff]  ;;  %v572_v37 = vpack.c.bf16 %v73_v29, %v65_v28 }
  0x3e   :  { %563 = vmatprep.subr.bf16.mxu1 %v562_v6  ;;  %v92_v36 = vld [vmem:[#allocation5 + $0x178] sm:$0xff]  ;;  %v81_v38 = vld [vmem:[#allocation5 + $0x120] sm:$0xff]  ;;  %v596_v39 = vpack.c.bf16 %v75_v32, %v67_v30  ;;  %v574_v40 = vpack.c.bf16 %v90_v34, %v82_v33  ;;  %v83_v42 = vld [vmem:[#allocation5 + $0x130] sm:$0xff]  ;;  %v470_v30 = vlaneseq }
  0x3f   :  { %v89_v41 = vld [vmem:[#allocation5 + $0x160] sm:$0xff]  ;;  %v758_v43 = vld [vmem:[#allocation2 + $0x8] sm:$0xff]  ;;  %v598_v44 = vpack.c.bf16 %v92_v36, %v84_v35  ;;  %v91_v45 = vld [vmem:[#allocation5 + $0x170] sm:$0xff] }
  0x40   :  { %541 = vmatpush1.bf16.msra.mxu0 %v540_v12  ;;  %v98_v46 = vld [vmem:[#allocation5 + $0x1a8] sm:$0xff]  ;;  %v100_v48 = vld [vmem:[#allocation5 + $0x1b8] sm:$0xff]  ;;  %v576_v50 = vpack.c.bf16 %v89_v41, %v81_v38  ;;  %v600_v51 = vpack.c.bf16 %v91_v45, %v83_v42  ;;  %v97_v53 = vld [vmem:[#allocation5 + $0x1a0] sm:$0xff] }
  0x41   :  { %565 = vmatpush1.bf16.msra.mxu1 %v564_v13  ;;  %567 = vmatprep.subr.bf16.mxu0 %v566_v14  ;;  %v106_v47 = vld [vmem:[#allocation5 + $0x1e8] sm:$0xff]  ;;  %v108_v49 = vld [vmem:[#allocation5 + $0x1f8] sm:$0xff]  ;;  %v105_v54 = vld [vmem:[#allocation5 + $0x1e0] sm:$0xff] }
  0x42   :  { %591 = vmatprep.subr.bf16.mxu1 %v590_v18  ;;  %v578_v52 = vpack.c.bf16 %v106_v47, %v98_v46  ;;  %v99_v55 = vld [vmem:[#allocation5 + $0x1b0] sm:$0xff]  ;;  %v602_v56 = vpack.c.bf16 %v108_v49, %v100_v48  ;;  %v114_v58 = vld [vmem:[#allocation5 + $0x228] sm:$0xff]  ;;  %v116_v60 = vld [vmem:[#allocation5 + $0x238] sm:$0xff]  ;;  %v580_v62 = vpack.c.bf16 %v105_v54, %v97_v53 }
  0x43   :  { %510 = vmatmul.mubr.msk.f32.vlgmr.msra.gmra.mrb[0].mxu0 %vm141_vm0, %v752_v24  ;;  %v107_v57 = vld [vmem:[#allocation5 + $0x1f0] sm:$0xff]  ;;  %v122_v59 = vld [vmem:[#allocation5 + $0x268] sm:$0xff]  ;;  %v124_v61 = vld [vmem:[#allocation5 + $0x278] sm:$0xff] }
  0x44   :  { %512 = vmatmul.mubr.msk.f32.vlgmr.msra.gmra.mrb[0].mxu1 %vm141_vm0, %v752_v24  ;;  %569 = vmatpush1.bf16.msra.mxu0 %v568_v25  ;;  %v604_v63 = vpack.c.bf16 %v107_v57, %v99_v55  ;;  %v582_v1 = vpack.c.bf16 %v122_v59, %v114_v58  ;;  %v113_v2 = vld [vmem:[#allocation5 + $0x220] sm:$0xff]  ;;  %v115_v4 = vld [vmem:[#allocation5 + $0x230] sm:$0xff]  ;;  %v606_v5 = vpack.c.bf16 %v124_v61, %v116_v60  ;;  %v130_v7 = vld [vmem:[#allocation5 + $0x2a8] sm:$0xff] }
  0x45   :  { %593 = vmatpush1.bf16.msra.mxu1 %v592_v26  ;;  %571 = vmatprep.subr.bf16.mxu0 %v570_v27  ;;  %v121_v3 = vld [vmem:[#allocation5 + $0x260] sm:$0xff]  ;;  %v123_v6 = vld [vmem:[#allocation5 + $0x270] sm:$0xff]  ;;  %v138_v8 = vld [vmem:[#allocation5 + $0x2e8] sm:$0xff] }
  0x46   :  { %595 = vmatprep.subr.bf16.mxu1 %v594_v31  ;;  %218 = vmatprep.mubr.f32.mxu0 %v702_v0  ;;  %v132_v9 = vld [vmem:[#allocation5 + $0x2b8] sm:$0xff]  ;;  %v584_v11 = vpack.c.bf16 %v121_v3, %v113_v2  ;;  %v608_v12 = vpack.c.bf16 %v123_v6, %v115_v4  ;;  %v586_v13 = vpack.c.bf16 %v138_v8, %v130_v7  ;;  %v129_v14 = vld [vmem:[#allocation5 + $0x2a0] sm:$0xff]  ;;  %v131_v17 = vld [vmem:[#allocation5 + $0x2b0] sm:$0xff] }
  0x47   :  { %295 = vmatprep.mubr.f32.mxu1 %v702_v0  ;;  %511 = vmatmul.mubr.msk.f32.gmra.mrb[2].mxu0 %vm141_vm0, %v758_v43  ;;  %v140_v10 = vld [vmem:[#allocation5 + $0x2f8] sm:$0xff]  ;;  %v137_v15 = vld [vmem:[#allocation5 + $0x2e0] sm:$0xff]  ;;  %v139_v18 = vld [vmem:[#allocation5 + $0x2f0] sm:$0xff] }
  0x48   :  { %573 = vmatpush1.bf16.msra.mxu0 %v572_v37  ;;  %513 = vmatmul.mubr.msk.f32.gmra.mrb[2].mxu1 %vm141_vm0, %v758_v43  ;;  %v610_v16 = vpack.c.bf16 %v140_v10, %v132_v9  ;;  %v588_v19 = vpack.c.bf16 %v137_v15, %v129_v14  ;;  %v612_v20 = vpack.c.bf16 %v139_v18, %v131_v17 }
  0x49   :  { %597 = vmatpush1.bf16.msra.mxu1 %v596_v39  ;;  %575 = vmatprep.subr.bf16.mxu0 %v574_v40 }
  0x4a   :  { %599 = vmatprep.subr.bf16.mxu1 %v598_v44  ;;  %366 = vmatprep.mubr.f32.mxu0 %v702_v0 }
  0x4b   :  { %443 = vmatprep.mubr.f32.mxu1 %v702_v0 }
  0x4c   :  { %577 = vmatpush1.bf16.msra.mxu0 %v576_v50 }
  0x4d   :  { %601 = vmatpush1.bf16.msra.mxu1 %v600_v51  ;;  %579 = vmatprep.subr.bf16.mxu0 %v578_v52 }
  0x4e   :  { %603 = vmatprep.subr.bf16.mxu1 %v602_v56 }
  0x50   :  { %581 = vmatpush1.bf16.msra.mxu0 %v580_v62 }
  0x51   :  { %605 = vmatpush1.bf16.msra.mxu1 %v604_v63  ;;  %583 = vmatprep.subr.bf16.mxu0 %v582_v1 }
  0x52   :  { %607 = vmatprep.subr.bf16.mxu1 %v606_v5 }
  0x54   :  { %585 = vmatpush1.bf16.msra.mxu0 %v584_v11 }
  0x55   :  { %609 = vmatpush1.bf16.msra.mxu1 %v608_v12  ;;  %587 = vmatprep.subr.bf16.mxu0 %v586_v13 }
  0x56   :  { %611 = vmatprep.subr.bf16.mxu1 %v610_v16 }
  0x58   :  { %589 = vmatpush1.bf16.msra.mxu0 %v588_v19 }
  0x59   :  { %613 = vmatpush1.bf16.msra.mxu1 %v612_v20 }
  0x5b   :  { %514 = vmatmul.mubr.msk.f32.vlgmr.msra.gmra.mrb[4].mxu0 %vm141_vm0, %v752_v24 }
  0x5c   :  { %516 = vmatmul.mubr.msk.f32.vlgmr.msra.gmra.mrb[4].mxu1 %vm141_vm0, %v752_v24  ;;  %372 = vmatprep.mubr.f32.mxu0 %v702_v0  ;;  %v471_v24 = vshrl.u32 %v470_v30, 7 }
  0x5d   :  { %449 = vmatprep.mubr.f32.mxu1 %v702_v0  ;;  %v468_v0 = vld [vmem:[%s795_s2] sm:$0x3]  ;;  %s703_s2 = smov [#allocation7]  }
  0x5e   :  { %v472_v31 = vsub.s32 0, %v471_v24  ;;  %v476_v32 = vsub.s32 1, %v471_v24  ;;  %s497_s13 = sshll.u32 %s703_s2, 4  ;;  %s498_s13 = int_to_ptr.vmem [resolvable:$true] %s497_s13 }
  0x5f   :  { %515 = vmatmul.mubr.msk.f32.gmra.mrb[6].mxu0 %vm141_vm0, %v758_v43  ;;  %s668_s14 = scalar_lea.vmem %s498_s13, 512  ;;  %p673_p3 = scmp.lt.s32.totalorder %s498_s13, %s498_s13 }
  0x60   :  { %517 = vmatmul.mubr.msk.f32.gmra.mrb[6].mxu1 %vm141_vm0, %v758_v43  ;;  %v473_v38 = vrot.slane %v468_v0, %v472_v31  ;;  %v477_v42 = vrot.slane %v468_v0, %v476_v32  ;;  %p669_p2 = scmp.ne.s32.totalorder %s498_s13, %s668_s14  ;;  %p674_p4 = scmp.lt.s32.totalorder %s668_s14, %s668_s14 }
  0x62   :  { %p675_p5 = por %p674_p4, %p673_p3 }
  0x64   :  { %p676_p6 = pnand %p675_p5, %p669_p2 }
 0x116   :  { %v214_v21 = vpop.f32.mrb[0].mxu0 }
 0x117   :  { %v291_v22 = vpop.f32.mrb[0].mxu1  ;;  %v216_v23 = vpop.f32.mrb[1].mxu0 }
 0x118   :  { %v293_v25 = vpop.f32.mrb[1].mxu1 }
 0x11a   :  { %v220_v26 = vpop.f32.mrb[2].mxu0 }
 0x11b   :  { %v297_v27 = vpop.f32.mrb[2].mxu1  ;;  %v222_v28 = vpop.f32.mrb[3].mxu0 }
 0x11c   :  { %v299_v29 = vpop.f32.mrb[3].mxu1 }
 0x12e   :  { %v368_v33 = vpop.f32.mrb[4].mxu0 }
 0x12f   :  { %v456_v34 = vmax.f32 %v214_v21, %v368_v33  ;;  %v445_v35 = vpop.f32.mrb[4].mxu1  ;;  %v370_v36 = vpop.f32.mrb[5].mxu0 }
 0x130   :  { %v458_v37 = vmax.f32 %v291_v22, %v445_v35  ;;  %v457_v39 = vmax.f32 %v216_v23, %v370_v36  ;;  %v447_v40 = vpop.f32.mrb[5].mxu1 }
 0x131   :  { %v459_v41 = vmax.f32 %v293_v25, %v447_v40 }
 0x132   :  { %v464_v43 = vmax.f32 %v456_v34, %v458_v37  ;;  %v374_v44 = vpop.f32.mrb[6].mxu0 }
 0x133   :  { %v465_v45 = vmax.f32 %v457_v39, %v459_v41  ;;  %v460_v46 = vmax.f32 %v220_v26, %v374_v44  ;;  %v451_v47 = vpop.f32.mrb[6].mxu1  ;;  %v376_v48 = vpop.f32.mrb[7].mxu0 }
 0x134   :  { %v480_v49 = vadd.f32 %v473_v38, %v464_v43  ;;  %v462_v50 = vmax.f32 %v297_v27, %v451_v47  ;;  %v461_v51 = vmax.f32 %v222_v28, %v376_v48  ;;  %v453_v52 = vpop.f32.mrb[7].mxu1 }
 0x135   :  { %v481_v53 = vadd.f32 %v477_v42, %v465_v45  ;;  %v463_v54 = vmax.f32 %v299_v29, %v453_v52 }
 0x136   :  { %v484_v55 = vmax.f32 %v480_v49, 0.0  ;;  %v466_v56 = vmax.f32 %v460_v46, %v462_v50 }
 0x137   :  { %v485_v57 = vmax.f32 %v481_v53, 0.0  ;;  %v467_v58 = vmax.f32 %v461_v51, %v463_v54 }
 0x138   :  { %488 = vst [vmem:[#allocation7] sm:$0xff] %v484_v55  ;;  %v482_v59 = vadd.f32 %v473_v38, %v466_v56 }
 0x139   :  { %489 = vst [vmem:[#allocation7 + $0x8] sm:$0xff] %v485_v57  ;;  %v483_v60 = vadd.f32 %v477_v42, %v467_v58 }
 0x13a   :  { %v486_v61 = vmax.f32 %v482_v59, 0.0 }
 0x13b   :  { %v487_v62 = vmax.f32 %v483_v60, 0.0 }
 0x13c   :  { %490 = vst [vmem:[#allocation7 + $0x10] sm:$0xff] %v486_v61 }
 0x13d   :  { %491 = vst [vmem:[#allocation7 + $0x18] sm:$0xff] %v487_v62 }
 0x13e   :  { %679 = shalt.err (!%p676_p6)
}
 0x13f   :  { %s680_s17 = scalar_lea.hbm %s796_s3, 512 }
 0x140   :  { %p681_p7 = scmp.ne.s32.totalorder %s796_s3, %s680_s17  ;;  %p684_p8 = scmp.lt.u32.totalorder %s680_s17, %s796_s3 }
 0x142   :  { %p686_p9 = pnand %p684_p8, %p681_p7 }
 0x144   :  { %689 = shalt.err (!%p686_p9)
}
 0x145   :  { %s704_s22 = smov 256   ;;  %s705_s23 = smov 16  }
 0x146   :  { %503 = dma.vmem_to_hbm [thread:$0]  %s498_s13, 512, %s796_s3, [#allocation4], %s704_s22, %s704_s22, %s705_s23  }
 0x147   :  { %694 = dma.done.wait [#allocation4], 512  }
 0x148   :  { %695 = vsyncadd [#allocation4], 4294966784 }
 0x149   :  { %507 = vsyncpa [#allocation3], 1 }
 0x14a   :  { %508 = vsyncpa [#allocation6], 1 }
 0x14b   :  { %509 = vsyncpa [#allocation4], 1 }

</bundles_post_ra>
